<compile_context>
chip_gen: v7x
topology: tpu7x:2x2x1
jax: 0.10.0
libtpu: 0.0.40
codegen_flags: <defaults>
</compile_context>

<pallas_src>
import functools

import jax
import jax.numpy as jnp
from jax.experimental import pallas as pl
from jax.experimental.pallas import tpu as pltpu

LANE = 128      # TPU vreg lane width (last dim)
SUBLANE = 8     # TPU vreg sublane width (second-to-last dim)


def _round_up(n, m):
    return ((n + m - 1) // m) * m


def _linear_clamp_kernel(x_ref, wt_ref, b_ref, o_ref, xs_ref, *,
                         min_val, max_val, batch, din, dout):
    # Zero the lane/sublane-aligned VMEM scratch, then copy the (batch, din)
    # activations into its top-left corner.  Explicit zeroing guarantees the
    # padded K columns/rows multiply to exactly 0 on the MXU.
    xs_ref[...] = jnp.zeros_like(xs_ref)
    xs_ref[0:batch, 0:din] = x_ref[...]

    # Canonical [M, K] x [K, N]: weight was transposed + padded at init.
    y = jax.lax.dot_general(
        xs_ref[...],
        wt_ref[...],
        dimension_numbers=(((1,), (0,)), ((), ())),
        preferred_element_type=jnp.float32,
    )
    y = y + b_ref[...]            # (1, Dout_p) broadcasts over batch (VPU)
    y = jnp.maximum(y, min_val)   # clamp_min
    y = jnp.minimum(y, max_val)   # clamp_max

    # Single masked store of only the valid (batch, dout) window — the wrapper
    # no longer pads or slices around the call.
    o_ref[...] = y[0:batch, 0:dout].astype(o_ref.dtype)


def prepare_params(weight, bias):
    """Once at init: nn.Linear weight (Dout, Din) -> W^T padded to (Din_p, Dout_p),
    bias (Dout,) -> (1, Dout_p), with lane-aligned (multiple-of-128) extents."""
    dout, din = weight.shape
    dout_p = _round_up(dout, LANE)
    din_p = _round_up(din, LANE)
    wt_pad = jnp.zeros((din_p, dout_p), weight.dtype).at[:din, :dout].set(weight.T)
    b_pad = jnp.zeros((1, dout_p), bias.dtype).at[0, :dout].set(bias)
    return wt_pad, b_pad


@functools.partial(jax.jit, static_argnames=("dout", "min_val", "max_val"))
def linear_clamp(x, wt_pad, b_pad, dout, min_val=0.0, max_val=5.0):
    """x: (B, Din) f32, unpadded; wt_pad/b_pad: pre-padded params from prepare_params()."""
    B, din = x.shape
    din_p, dout_p = wt_pad.shape
    b_p = _round_up(B, SUBLANE)

    kernel = functools.partial(
        _linear_clamp_kernel,
        min_val=float(min_val), max_val=float(max_val),
        batch=B, din=din, dout=dout,
    )
    # Note: at this size plain jitted jnp.clip(x @ W.T + b, 0, 5) may win on
    # pure launch latency; this kernel is the fused single-dispatch variant.
    return pl.pallas_call(
        kernel,
        out_shape=jax.ShapeDtypeStruct((B, dout), x.dtype),
        in_specs=[
            pl.BlockSpec(memory_space=pltpu.MemorySpace.VMEM),  # x (B, Din)
            pl.BlockSpec(memory_space=pltpu.MemorySpace.VMEM),  # W^T padded
            pl.BlockSpec(memory_space=pltpu.MemorySpace.VMEM),  # bias padded
        ],
        out_specs=pl.BlockSpec(memory_space=pltpu.MemorySpace.VMEM),
        scratch_shapes=[pltpu.VMEM((b_p, din_p), jnp.float32)],
    )(x, wt_pad, b_pad)


if __name__ == "__main__":
    key = jax.random.PRNGKey(0)
    k_x, k_w, k_b = jax.random.split(key, 3)

    B, Din, Dout = 8, 10, 10
    x = jax.random.normal(k_x, (B, Din), dtype=jnp.float32) * 3.0
    # deterministic "nn.Linear(10, 10)"-shaped params (PyTorch convention)
    bound = 1.0 / (Din ** 0.5)
    weight = jax.random.uniform(k_w, (Dout, Din), jnp.float32, -bound, bound)
    bias = jax.random.uniform(k_b, (Dout,), jnp.float32, -bound, bound)

    # Pad + pre-transpose params once ("init time").
    wt_pad, b_pad = prepare_params(weight, bias)

    out = linear_clamp(x, wt_pad, b_pad, Dout, min_val=0.0, max_val=5.0)
    out = jax.block_until_ready(out)

    # Reference check in plain JAX.
    ref = jnp.clip(x @ weight.T + bias, 0.0, 5.0)
    assert out.shape == (B, Dout)
    assert jnp.allclose(out, ref, atol=1e-5, rtol=1e-5)

    print("KERNEL_OK")
</pallas_src>

<mosaic_0001>
module attributes {stable_mosaic.version = 11 : i64} {
  func.func @_linear_clamp_kernel(%arg0: memref<8x10xf32, #tpu.memory_space<vmem>>, %arg1: memref<128x128xf32, #tpu.memory_space<vmem>>, %arg2: memref<1x128xf32, #tpu.memory_space<vmem>>, %arg3: memref<8x10xf32, #tpu.memory_space<vmem>>, %arg4: memref<8x128xf32, #tpu.memory_space<vmem>>) attributes {dimension_semantics = [], scalar_prefetch = 0 : i64, scratch_operands = 1 : i64, tpu.core_type = #tpu.core_type<tc>} {
    %cst = arith.constant 0.000000e+00 : f32
    %0 = vector.broadcast %cst : f32 to vector<8x128xf32>
    %c0 = arith.constant 0 : index
    %c0_0 = arith.constant 0 : index
    %1 = vector.load %arg4[%c0, %c0_0] : memref<8x128xf32, #tpu.memory_space<vmem>>, vector<8x128xf32>
    tpu.vector_store %arg4[%c0, %c0_0], %0 {strides = array<i32>} : memref<8x128xf32, #tpu.memory_space<vmem>>, vector<8x128xf32>,
    %c0_1 = arith.constant 0 : index
    %c0_2 = arith.constant 0 : index
    %2 = vector.load %arg0[%c0_1, %c0_2] : memref<8x10xf32, #tpu.memory_space<vmem>>, vector<8x10xf32>
    %c0_3 = arith.constant 0 : index
    %c0_4 = arith.constant 0 : index
    %3 = vector.load %arg4[%c0_3, %c0_4] : memref<8x128xf32, #tpu.memory_space<vmem>>, vector<8x10xf32>
    tpu.vector_store %arg4[%c0_3, %c0_4], %2 {strides = array<i32>} : memref<8x128xf32, #tpu.memory_space<vmem>>, vector<8x10xf32>,
    %c0_5 = arith.constant 0 : index
    %c0_6 = arith.constant 0 : index
    %4 = vector.load %arg4[%c0_5, %c0_6] : memref<8x128xf32, #tpu.memory_space<vmem>>, vector<8x128xf32>
    %c0_7 = arith.constant 0 : index
    %c0_8 = arith.constant 0 : index
    %5 = vector.load %arg1[%c0_7, %c0_8] : memref<128x128xf32, #tpu.memory_space<vmem>>, vector<128x128xf32>
    %cst_9 = arith.constant dense<0.000000e+00> : vector<8x128xf32>
    %6 = tpu.matmul %4, %5, %cst_9 {dimension_numbers = #tpu.dot_dimension_numbers<[1], [0], [0], [1], [0, 0, 1, 1], [], []>} : vector<8x128xf32>, vector<128x128xf32>, vector<8x128xf32> -> vector<8x128xf32>
    %c0_10 = arith.constant 0 : index
    %c0_11 = arith.constant 0 : index
    %7 = vector.load %arg2[%c0_10, %c0_11] : memref<1x128xf32, #tpu.memory_space<vmem>>, vector<1x128xf32>
    %8 = vector.broadcast %7 : vector<1x128xf32> to vector<8x128xf32>
    %9 = arith.addf %6, %8 : vector<8x128xf32>
    %cst_12 = arith.constant 0.000000e+00 : f32
    %10 = vector.broadcast %cst_12 : f32 to vector<8x128xf32>
    %11 = arith.maximumf %9, %10 : vector<8x128xf32>
    %cst_13 = arith.constant 5.000000e+00 : f32
    %12 = vector.broadcast %cst_13 : f32 to vector<8x128xf32>
    %13 = arith.minimumf %11, %12 : vector<8x128xf32>
    %14 = vector.extract_strided_slice %13 {offsets = [0, 0], sizes = [8, 10], strides = [1, 1]} : vector<8x128xf32> to vector<8x10xf32>
    %c0_14 = arith.constant 0 : index
    %c0_15 = arith.constant 0 : index
    %15 = vector.load %arg3[%c0_14, %c0_15] : memref<8x10xf32, #tpu.memory_space<vmem>>, vector<8x10xf32>
    tpu.vector_store %arg3[%c0_14, %c0_15], %14 {strides = array<i32>} : memref<8x10xf32, #tpu.memory_space<vmem>>, vector<8x10xf32>,
    return
  }
}

</mosaic_0001>

<bundles_post_ra>
// kernel: linear_clamp.1
= control target key start
LH: loop header
LB: loop body
LE: loop exit
PB: predicated region body
PF: predicated region fallthrough
CT: control target
= control target key end

     0   :  { %8 = vsyncpa [#allocation4], 0  ;;  %s391_s0 = inlined_call_operand.hbm [shape: f32[8,10], index: 0, kind: input, shape index: {}]   ;;  %s392_s1 = inlined_call_operand.hbm [shape: f32[128,128], index: 1, kind: input, shape index: {}]   ;;  %s393_s2 = inlined_call_operand.vmem [shape: f32[1,128], index: 2, kind: input, shape index: {}]   ;;  %s394_s3 = inlined_call_operand.hbm [shape: f32[8,10], index: 3, kind: output, shape index: {}]  }
   0x1   :  { %9 = vsyncpa [#allocation7], 0 }
   0x2   :  { %10 = vsyncpa [#allocation5], 0  ;;  %s315_s12 = smov [#allocation3]   ;;  %s316_s14 = smov [#allocation6]  }
   0x3   :  { %s17_s13 = sshll.u32 %s315_s12, 4  ;;  %s26_s15 = sshll.u32 %s316_s14, 4  ;;  %s18_s13 = int_to_ptr.vmem [resolvable:$true] %s17_s13  ;;  %s343_s15 = int_to_ptr.vmem [resolvable:$true] %s26_s15 }
   0x4   :  { %s243_s18 = scalar_lea.hbm %s391_s0, 128 }
   0x5   :  { %p244_p0 = scmp.ne.s32.totalorder %s391_s0, %s243_s18  ;;  %p247_p1 = scmp.lt.u32.totalorder %s243_s18, %s391_s0 }
   0x7   :  { %p249_p2 = pnand %p247_p1, %p244_p0 }
   0x9   :  { %252 = shalt.err (!%p249_p2)
}
   0xa   :  { %s253_s23 = scalar_lea.vmem %s18_s13, 128  ;;  %p258_p4 = scmp.lt.s32.totalorder %s18_s13, %s18_s13 }
   0xb   :  { %p254_p3 = scmp.ne.s32.totalorder %s18_s13, %s253_s23  ;;  %p259_p5 = scmp.lt.s32.totalorder %s253_s23, %s253_s23 }
   0xd   :  { %p260_p6 = por %p259_p5, %p258_p4 }
   0xf   :  { %p261_p7 = pnand %p260_p6, %p254_p3 }
  0x11   :  { %264 = shalt.err (!%p261_p7)
}
  0x12   :  { %20 = dma.hbm_to_vmem [thread:$0]  %s391_s0, 128, %s18_s13, [#allocation4]  }
  0x13   :  { %s265_s28 = scalar_lea.hbm %s392_s1, 2048 }
  0x14   :  { %p266_p8 = scmp.ne.s32.totalorder %s392_s1, %s265_s28  ;;  %p269_p9 = scmp.lt.u32.totalorder %s265_s28, %s392_s1 }
  0x16   :  { %p271_p10 = pnand %p269_p9, %p266_p8 }
  0x18   :  { %274 = shalt.err (!%p271_p10)
}
  0x19   :  { %s275_s6 = scalar_lea.vmem %s343_s15, 2048  ;;  %p280_p12 = scmp.lt.s32.totalorder %s343_s15, %s343_s15 }
  0x1a   :  { %p276_p11 = scmp.ne.s32.totalorder %s343_s15, %s275_s6  ;;  %p281_p13 = scmp.lt.s32.totalorder %s275_s6, %s275_s6 }
  0x1c   :  { %p282_p0 = por %p281_p13, %p280_p12 }
  0x1e   :  { %p283_p1 = pnand %p282_p0, %p276_p11 }
  0x20   :  { %286 = shalt.err (!%p283_p1)
}
  0x21   :  { %s317_s0 = smov 128   ;;  %s318_s7 = smov 8  }
  0x22   :  { %32 = dma.hbm_to_vmem [thread:$0]  %s392_s1, 2048, %s343_s15, [#allocation7], %s317_s0, %s317_s0, %s318_s7  }
  0x23   :  { %309 = dma.done.wait [#allocation4], 128  }
  0x24   :  { %310 = vsyncadd [#allocation4], 4294967168 }
  0x25   :  { %311 = dma.done.wait [#allocation7], 2048  }
  0x26   :  { %312 = vsyncadd [#allocation7], 4294965248  ;;  %v319_v0 = vmov 0.0|0.0   ;;  %v320_v1 = vmov 0.0   ;;  %vm321_vm0 = vmmov 0   ;;  %v46_v2 = vld [vmem:[#allocation6] sm:$0xff] }
  0x27   :  { %211 = vmatprep.subr.bf16.mxu0 %v319_v0  ;;  %41 = vst [vmem:[#allocation2] sm:$0xff] %v320_v1  ;;  %208 = vmatprep.mubr.msk.f32.mxu0 %vm321_vm0, %v320_v1  ;;  %v47_v3 = vld [vmem:[#allocation6 + $0x8] sm:$0xff]  ;;  %v48_v4 = vld [vmem:[#allocation6 + $0x10] sm:$0xff]  ;;  %v49_v6 = vld [vmem:[#allocation6 + $0x18] sm:$0xff]  ;;  %vm43_vm1 = vcmask 80896   ;;  %s322_s11 = smov [#allocation8]  }
  0x28   :  { %v212_v5 = vpack.c.bf16 %v47_v3, %v46_v2  ;;  %v215_v7 = vpack.c.bf16 %v49_v6, %v48_v4  ;;  %v50_v8 = vld [vmem:[#allocation6 + $0x20] sm:$0xff]  ;;  %v51_v9 = vld [vmem:[#allocation6 + $0x28] sm:$0xff]  ;;  %v42_v10 = vld [vmem:[#allocation3] sm:$0xff]  ;;  %s148_s12 = sshll.u32 %s322_s11, 4  ;;  %s149_s12 = int_to_ptr.vmem [resolvable:$true] %s148_s12 }
  0x29   :  { %44 = vst.msk [vmem:[#allocation2] sm:$0xff] %vm43_vm1, %v42_v10  ;;  %v218_v11 = vpack.c.bf16 %v51_v9, %v50_v8  ;;  %v52_v12 = vld [vmem:[#allocation6 + $0x30] sm:$0xff]  ;;  %v53_v13 = vld [vmem:[#allocation6 + $0x38] sm:$0xff]  ;;  %v54_v15 = vld [vmem:[#allocation6 + $0x40] sm:$0xff]  ;;  %s287_s13 = scalar_lea.vmem %s149_s12, 128  ;;  %p292_p3 = scmp.lt.s32.totalorder %s149_s12, %s149_s12 }
  0x2a   :  { %213 = vmatpush3.bf16.msra.mxu0 %v212_v5  ;;  %v221_v14 = vpack.c.bf16 %v53_v13, %v52_v12  ;;  %v55_v16 = vld [vmem:[#allocation6 + $0x48] sm:$0xff]  ;;  %v56_v18 = vld [vmem:[#allocation6 + $0x50] sm:$0xff]  ;;  %v57_v19 = vld [vmem:[#allocation6 + $0x58] sm:$0xff]  ;;  %p288_p2 = scmp.ne.s32.totalorder %s149_s12, %s287_s13  ;;  %p293_p4 = scmp.lt.s32.totalorder %s287_s13, %s287_s13 }
  0x2b   :  { %214 = vmatprep.subr.bf16.mxu0 %v319_v0  ;;  %v224_v17 = vpack.c.bf16 %v55_v16, %v54_v15  ;;  %v227_v20 = vpack.c.bf16 %v57_v19, %v56_v18  ;;  %v58_v21 = vld [vmem:[#allocation6 + $0x60] sm:$0xff]  ;;  %v59_v22 = vld [vmem:[#allocation6 + $0x68] sm:$0xff]  ;;  %v60_v24 = vld [vmem:[#allocation6 + $0x70] sm:$0xff] }
  0x2c   :  { %v230_v23 = vpack.c.bf16 %v59_v22, %v58_v21  ;;  %v61_v25 = vld [vmem:[#allocation6 + $0x78] sm:$0xff]  ;;  %v158_v28 = vld [vmem:[%s393_s2] ss:$0 sm:$0xff]  ;;  %p294_p5 = por %p293_p4, %p292_p3 }
  0x2d   :  { %v233_v26 = vpack.c.bf16 %v61_v25, %v60_v24 }
  0x2e   :  { %216 = vmatpush3.bf16.msra.mxu0 %v215_v7  ;;  %p295_p6 = pnand %p294_p5, %p288_p2 }
  0x2f   :  { %217 = vmatprep.subr.bf16.mxu0 %v319_v0 }
  0x30   :  { %v45_v27 = vld [vmem:[#allocation2] sm:$0xff] }
  0x32   :  { %219 = vmatpush3.bf16.msra.mxu0 %v218_v11 }
  0x33   :  { %220 = vmatprep.subr.bf16.mxu0 %v319_v0 }
  0x36   :  { %222 = vmatpush3.bf16.msra.mxu0 %v221_v14 }
  0x37   :  { %223 = vmatprep.subr.bf16.mxu0 %v319_v0 }
  0x3a   :  { %225 = vmatpush3.bf16.msra.mxu0 %v224_v17 }
  0x3b   :  { %226 = vmatprep.subr.bf16.mxu0 %v319_v0 }
  0x3e   :  { %228 = vmatpush3.bf16.msra.mxu0 %v227_v20 }
  0x3f   :  { %229 = vmatprep.subr.bf16.mxu0 %v319_v0 }
  0x42   :  { %231 = vmatpush3.bf16.msra.mxu0 %v230_v23 }
  0x43   :  { %232 = vmatprep.subr.bf16.mxu0 %v319_v0 }
  0x46   :  { %234 = vmatpush3.bf16.msra.mxu0 %v233_v26 }
  0x49   :  { %209 = vmatmul.mubr.f32.vlgmr.msra.gmra.mrb[0].mxu0 %v45_v27 }
 0x11c   :  { %v135_v29 = vpop.f32.mrb[0].mxu0 }
 0x11d   :  { %v136_v30 = vadd.f32 %v158_v28, %v135_v29  ;;  %v210_v31 = vpop.f32.mrb[1].mxu0 }
 0x11f   :  { %v139_v32 = vmax.f32 %v136_v30, 0.0 }
 0x121   :  { %v140_v33 = vmin.f32 %v139_v32, 5.0 }
 0x123   :  { %141 = vst.msk [vmem:[#allocation8] sm:$0xff] %vm43_vm1, %v140_v33 }
 0x124   :  { %298 = shalt.err (!%p295_p6)
}
 0x125   :  { %s299_s2 = scalar_lea.hbm %s394_s3, 128 }
 0x126   :  { %p300_p7 = scmp.ne.s32.totalorder %s394_s3, %s299_s2  ;;  %p303_p8 = scmp.lt.u32.totalorder %s299_s2, %s394_s3 }
 0x128   :  { %p305_p9 = pnand %p303_p8, %p300_p7 }
 0x12a   :  { %308 = shalt.err (!%p305_p9)
}
 0x12b   :  { %151 = dma.vmem_to_hbm [thread:$0]  %s149_s12, 128, %s394_s3, [#allocation5]  }
 0x12c   :  { %313 = dma.done.wait [#allocation5], 128  }
 0x12d   :  { %314 = vsyncadd [#allocation5], 4294967168 }
 0x12e   :  { %155 = vsyncpa [#allocation4], 1 }
 0x12f   :  { %156 = vsyncpa [#allocation7], 1 }
 0x130   :  { %157 = vsyncpa [#allocation5], 1 }

</bundles_post_ra>
